<compile_context>
chip_gen: v7x
topology: tpu7x:2x2x1
jax: 0.10.0
libtpu: 0.0.40
codegen_flags: <defaults>
</compile_context>

<pallas_src>
import functools

import jax
import jax.numpy as jnp
from jax.experimental import pallas as pl
from jax.experimental.pallas import tpu as pltpu

INPUT_SIZE = 2
HIDDEN_SIZE = 4
OUTPUT_SIZE = 1

# Lane-dense batch tile. Tiny per-tile VMEM footprint ((2+1) * TILE_B * 4 B,
# double-buffered), so this is safe on v5e/v6e (128 MiB VMEM) and v7x (64 MiB).
MAX_TILE_B = 2048


def _round_up(n: int, m: int) -> int:
    return ((n + m - 1) // m) * m


def mlp_kernel(w1_ref, b1_ref, w2_ref, b2_ref, x_ref, o_ref):
    """One batch tile: x_ref (INPUT_SIZE, TILE_B) -> o_ref (OUTPUT_SIZE, TILE_B).

    Weights are torch-style: w1 (HIDDEN, INPUT), w2 (OUT, HIDDEN); all in SMEM.
    All math stays on the VPU (scalar splat * vector) + EUP (sigmoid).
    """
    x = x_ref[...]  # (INPUT_SIZE, TILE_B) f32, batch on lanes

    # Layer 1: h[j, :] = sigmoid(sum_k w1[j, k] * x[k, :] + b1[j])
    h = []
    for j in range(HIDDEN_SIZE):
        acc = w1_ref[j, 0] * x[0:1, :]
        for k in range(1, INPUT_SIZE):
            acc = acc + w1_ref[j, k] * x[k:k + 1, :]
        h.append(jax.nn.sigmoid(acc + b1_ref[j]))

    # Layer 2: o[m, :] = sigmoid(sum_j w2[m, j] * h[j, :] + b2[m])
    for m in range(OUTPUT_SIZE):
        acc = w2_ref[m, 0] * h[0]
        for j in range(1, HIDDEN_SIZE):
            acc = acc + w2_ref[m, j] * h[j]
        o_ref[m:m + 1, :] = jax.nn.sigmoid(acc + b2_ref[m]).astype(o_ref.dtype)


def deep_neural_network(x, w1, b1, w2, b2):
    """Fused forward pass: sigmoid(sigmoid(x @ w1.T + b1) @ w2.T + b2).

    x:  (B, INPUT_SIZE) f32
    w1: (HIDDEN_SIZE, INPUT_SIZE), b1: (HIDDEN_SIZE,)   -- torch nn.Linear layout
    w2: (OUTPUT_SIZE, HIDDEN_SIZE), b2: (OUTPUT_SIZE,)
    returns (B, OUTPUT_SIZE) f32
    """
    B = x.shape[0]
    tile_b = min(MAX_TILE_B, _round_up(B, 128))
    b_pad = _round_up(B, tile_b)

    # Layout plumbing (not compute hoisting): batch on the lane axis, padded to
    # a multiple of the tile. Padded columns are sliced off after the kernel.
    x_t = jnp.transpose(x)  # (INPUT_SIZE, B)
    if b_pad != B:
        x_t = jnp.pad(x_t, ((0, 0), (0, b_pad - B)))

    grid = (b_pad // tile_b,)
    smem = pl.BlockSpec(memory_space=pltpu.MemorySpace.SMEM)

    out_t = pl.pallas_call(
        mlp_kernel,
        out_shape=jax.ShapeDtypeStruct((OUTPUT_SIZE, b_pad), jnp.float32),
        grid_spec=pltpu.PrefetchScalarGridSpec(
            num_scalar_prefetch=0,
            grid=grid,
            in_specs=[
                smem,  # w1 (HIDDEN, INPUT)
                smem,  # b1 (HIDDEN,)
                smem,  # w2 (OUT, HIDDEN)
                smem,  # b2 (OUT,)
                pl.BlockSpec((INPUT_SIZE, tile_b), lambda i: (0, i)),  # x tile
            ],
            out_specs=pl.BlockSpec((OUTPUT_SIZE, tile_b), lambda i: (0, i)),
        ),
        compiler_params=pltpu.CompilerParams(
            dimension_semantics=("parallel",),  # shard batch tiles across TCs (v7x)
        ),
    )(w1, b1, w2, b2, x_t)

    return jnp.transpose(out_t[:, :B])  # (B, OUTPUT_SIZE)


def reference_forward(x, w1, b1, w2, b2):
    h = jax.nn.sigmoid(x @ w1.T + b1)
    return jax.nn.sigmoid(h @ w2.T + b2)


if __name__ == "__main__":
    key = jax.random.PRNGKey(0)
    kx, k1, k2, k3, k4 = jax.random.split(key, 5)

    batch = 8
    x = jax.random.normal(kx, (batch, INPUT_SIZE), dtype=jnp.float32)

    # PyTorch-style init: uniform(-1/sqrt(fan_in), 1/sqrt(fan_in)), nn.Linear layout.
    lim1 = 1.0 / float(INPUT_SIZE) ** 0.5
    lim2 = 1.0 / float(HIDDEN_SIZE) ** 0.5
    w1 = jax.random.uniform(k1, (HIDDEN_SIZE, INPUT_SIZE), jnp.float32, -lim1, lim1)
    b1 = jax.random.uniform(k2, (HIDDEN_SIZE,), jnp.float32, -lim1, lim1)
    w2 = jax.random.uniform(k3, (OUTPUT_SIZE, HIDDEN_SIZE), jnp.float32, -lim2, lim2)
    b2 = jax.random.uniform(k4, (OUTPUT_SIZE,), jnp.float32, -lim2, lim2)

    fwd = jax.jit(deep_neural_network)
    out = jax.block_until_ready(fwd(x, w1, b1, w2, b2))

    ref = reference_forward(x, w1, b1, w2, b2)
    assert out.shape == (batch, OUTPUT_SIZE), out.shape
    assert jnp.allclose(out, ref, atol=1e-5, rtol=1e-5), (out, ref)

    # Equivalent of module.predict(x): threshold at 0.5 (plain JAX glue).
    preds = jax.block_until_ready((out >= 0.5).astype(jnp.int32))

    print("KERNEL_OK")
</pallas_src>

<mosaic_0001>
module attributes {stable_mosaic.version = 11 : i64} {
  func.func @mlp_kernel(%arg0: i32, %arg1: memref<4x2xf32, #tpu.memory_space<smem>>, %arg2: memref<4xf32, #tpu.memory_space<smem>>, %arg3: memref<1x4xf32, #tpu.memory_space<smem>>, %arg4: memref<1xf32, #tpu.memory_space<smem>>, %arg5: memref<2x128xf32, #tpu.memory_space<vmem>>, %arg6: memref<1x128xf32, #tpu.memory_space<vmem>>) attributes {dimension_semantics = [#tpu.dimension_semantics<parallel>], iteration_bounds = array<i64: 1>, scalar_prefetch = 0 : i64, scratch_operands = 0 : i64, tpu.core_type = #tpu.core_type<tc>, window_params = [{transform_indices = @transform_0, window_bounds = array<i64: 4, 2>}, {transform_indices = @transform_1, window_bounds = array<i64: 4>}, {transform_indices = @transform_2, window_bounds = array<i64: 1, 4>}, {transform_indices = @transform_3, window_bounds = array<i64: 1>}, {transform_indices = @transform_4, window_bounds = array<i64: 2, 128>}, {transform_indices = @transform_5, window_bounds = array<i64: 1, 128>}]} {
    %c0 = arith.constant 0 : index
    %c0_0 = arith.constant 0 : index
    %0 = vector.load %arg5[%c0, %c0_0] : memref<2x128xf32, #tpu.memory_space<vmem>>, vector<2x128xf32>
    %c0_1 = arith.constant 0 : index
    %c0_2 = arith.constant 0 : index
    %1 = memref.load %arg1[%c0_1, %c0_2] : memref<4x2xf32, #tpu.memory_space<smem>>
    %2 = vector.extract_strided_slice %0 {offsets = [0, 0], sizes = [1, 128], strides = [1, 1]} : vector<2x128xf32> to vector<1x128xf32>
    %3 = vector.broadcast %1 : f32 to vector<1x128xf32>
    %4 = arith.mulf %3, %2 : vector<1x128xf32>
    %c0_3 = arith.constant 0 : index
    %c1 = arith.constant 1 : index
    %5 = memref.load %arg1[%c0_3, %c1] : memref<4x2xf32, #tpu.memory_space<smem>>
    %6 = vector.extract_strided_slice %0 {offsets = [1, 0], sizes = [1, 128], strides = [1, 1]} : vector<2x128xf32> to vector<1x128xf32>
    %7 = vector.broadcast %5 : f32 to vector<1x128xf32>
    %8 = arith.mulf %7, %6 : vector<1x128xf32>
    %9 = arith.addf %4, %8 : vector<1x128xf32>
    %c0_4 = arith.constant 0 : index
    %10 = memref.load %arg2[%c0_4] : memref<4xf32, #tpu.memory_space<smem>>
    %11 = vector.broadcast %10 : f32 to vector<1x128xf32>
    %12 = arith.addf %9, %11 : vector<1x128xf32>
    %13 = arith.negf %12 : vector<1x128xf32>
    %14 = math.exp %13 : vector<1x128xf32>
    %cst = arith.constant 1.000000e+00 : f32
    %15 = vector.broadcast %cst : f32 to vector<1x128xf32>
    %16 = arith.addf %15, %14 : vector<1x128xf32>
    %17 = arith.divf %15, %16 : vector<1x128xf32>
    %c1_5 = arith.constant 1 : index
    %c0_6 = arith.constant 0 : index
    %18 = memref.load %arg1[%c1_5, %c0_6] : memref<4x2xf32, #tpu.memory_space<smem>>
    %19 = vector.extract_strided_slice %0 {offsets = [0, 0], sizes = [1, 128], strides = [1, 1]} : vector<2x128xf32> to vector<1x128xf32>
    %20 = vector.broadcast %18 : f32 to vector<1x128xf32>
    %21 = arith.mulf %20, %19 : vector<1x128xf32>
    %c1_7 = arith.constant 1 : index
    %c1_8 = arith.constant 1 : index
    %22 = memref.load %arg1[%c1_7, %c1_8] : memref<4x2xf32, #tpu.memory_space<smem>>
    %23 = vector.extract_strided_slice %0 {offsets = [1, 0], sizes = [1, 128], strides = [1, 1]} : vector<2x128xf32> to vector<1x128xf32>
    %24 = vector.broadcast %22 : f32 to vector<1x128xf32>
    %25 = arith.mulf %24, %23 : vector<1x128xf32>
    %26 = arith.addf %21, %25 : vector<1x128xf32>
    %c1_9 = arith.constant 1 : index
    %27 = memref.load %arg2[%c1_9] : memref<4xf32, #tpu.memory_space<smem>>
    %28 = vector.broadcast %27 : f32 to vector<1x128xf32>
    %29 = arith.addf %26, %28 : vector<1x128xf32>
    %30 = arith.negf %29 : vector<1x128xf32>
    %31 = math.exp %30 : vector<1x128xf32>
    %cst_10 = arith.constant 1.000000e+00 : f32
    %32 = vector.broadcast %cst_10 : f32 to vector<1x128xf32>
    %33 = arith.addf %32, %31 : vector<1x128xf32>
    %34 = arith.divf %32, %33 : vector<1x128xf32>
    %c2 = arith.constant 2 : index
    %c0_11 = arith.constant 0 : index
    %35 = memref.load %arg1[%c2, %c0_11] : memref<4x2xf32, #tpu.memory_space<smem>>
    %36 = vector.extract_strided_slice %0 {offsets = [0, 0], sizes = [1, 128], strides = [1, 1]} : vector<2x128xf32> to vector<1x128xf32>
    %37 = vector.broadcast %35 : f32 to vector<1x128xf32>
    %38 = arith.mulf %37, %36 : vector<1x128xf32>
    %c2_12 = arith.constant 2 : index
    %c1_13 = arith.constant 1 : index
    %39 = memref.load %arg1[%c2_12, %c1_13] : memref<4x2xf32, #tpu.memory_space<smem>>
    %40 = vector.extract_strided_slice %0 {offsets = [1, 0], sizes = [1, 128], strides = [1, 1]} : vector<2x128xf32> to vector<1x128xf32>
    %41 = vector.broadcast %39 : f32 to vector<1x128xf32>
    %42 = arith.mulf %41, %40 : vector<1x128xf32>
    %43 = arith.addf %38, %42 : vector<1x128xf32>
    %c2_14 = arith.constant 2 : index
    %44 = memref.load %arg2[%c2_14] : memref<4xf32, #tpu.memory_space<smem>>
    %45 = vector.broadcast %44 : f32 to vector<1x128xf32>
    %46 = arith.addf %43, %45 : vector<1x128xf32>
    %47 = arith.negf %46 : vector<1x128xf32>
    %48 = math.exp %47 : vector<1x128xf32>
    %cst_15 = arith.constant 1.000000e+00 : f32
    %49 = vector.broadcast %cst_15 : f32 to vector<1x128xf32>
    %50 = arith.addf %49, %48 : vector<1x128xf32>
    %51 = arith.divf %49, %50 : vector<1x128xf32>
    %c3 = arith.constant 3 : index
    %c0_16 = arith.constant 0 : index
    %52 = memref.load %arg1[%c3, %c0_16] : memref<4x2xf32, #tpu.memory_space<smem>>
    %53 = vector.extract_strided_slice %0 {offsets = [0, 0], sizes = [1, 128], strides = [1, 1]} : vector<2x128xf32> to vector<1x128xf32>
    %54 = vector.broadcast %52 : f32 to vector<1x128xf32>
    %55 = arith.mulf %54, %53 : vector<1x128xf32>
    %c3_17 = arith.constant 3 : index
    %c1_18 = arith.constant 1 : index
    %56 = memref.load %arg1[%c3_17, %c1_18] : memref<4x2xf32, #tpu.memory_space<smem>>
    %57 = vector.extract_strided_slice %0 {offsets = [1, 0], sizes = [1, 128], strides = [1, 1]} : vector<2x128xf32> to vector<1x128xf32>
    %58 = vector.broadcast %56 : f32 to vector<1x128xf32>
    %59 = arith.mulf %58, %57 : vector<1x128xf32>
    %60 = arith.addf %55, %59 : vector<1x128xf32>
    %c3_19 = arith.constant 3 : index
    %61 = memref.load %arg2[%c3_19] : memref<4xf32, #tpu.memory_space<smem>>
    %62 = vector.broadcast %61 : f32 to vector<1x128xf32>
    %63 = arith.addf %60, %62 : vector<1x128xf32>
    %64 = arith.negf %63 : vector<1x128xf32>
    %65 = math.exp %64 : vector<1x128xf32>
    %cst_20 = arith.constant 1.000000e+00 : f32
    %66 = vector.broadcast %cst_20 : f32 to vector<1x128xf32>
    %67 = arith.addf %66, %65 : vector<1x128xf32>
    %68 = arith.divf %66, %67 : vector<1x128xf32>
    %c0_21 = arith.constant 0 : index
    %c0_22 = arith.constant 0 : index
    %69 = memref.load %arg3[%c0_21, %c0_22] : memref<1x4xf32, #tpu.memory_space<smem>>
    %70 = vector.broadcast %69 : f32 to vector<1x128xf32>
    %71 = arith.mulf %70, %17 : vector<1x128xf32>
    %c0_23 = arith.constant 0 : index
    %c1_24 = arith.constant 1 : index
    %72 = memref.load %arg3[%c0_23, %c1_24] : memref<1x4xf32, #tpu.memory_space<smem>>
    %73 = vector.broadcast %72 : f32 to vector<1x128xf32>
    %74 = arith.mulf %73, %34 : vector<1x128xf32>
    %75 = arith.addf %71, %74 : vector<1x128xf32>
    %c0_25 = arith.constant 0 : index
    %c2_26 = arith.constant 2 : index
    %76 = memref.load %arg3[%c0_25, %c2_26] : memref<1x4xf32, #tpu.memory_space<smem>>
    %77 = vector.broadcast %76 : f32 to vector<1x128xf32>
    %78 = arith.mulf %77, %51 : vector<1x128xf32>
    %79 = arith.addf %75, %78 : vector<1x128xf32>
    %c0_27 = arith.constant 0 : index
    %c3_28 = arith.constant 3 : index
    %80 = memref.load %arg3[%c0_27, %c3_28] : memref<1x4xf32, #tpu.memory_space<smem>>
    %81 = vector.broadcast %80 : f32 to vector<1x128xf32>
    %82 = arith.mulf %81, %68 : vector<1x128xf32>
    %83 = arith.addf %79, %82 : vector<1x128xf32>
    %c0_29 = arith.constant 0 : index
    %84 = memref.load %arg4[%c0_29] : memref<1xf32, #tpu.memory_space<smem>>
    %85 = vector.broadcast %84 : f32 to vector<1x128xf32>
    %86 = arith.addf %83, %85 : vector<1x128xf32>
    %87 = arith.negf %86 : vector<1x128xf32>
    %88 = math.exp %87 : vector<1x128xf32>
    %cst_30 = arith.constant 1.000000e+00 : f32
    %89 = vector.broadcast %cst_30 : f32 to vector<1x128xf32>
    %90 = arith.addf %89, %88 : vector<1x128xf32>
    %91 = arith.divf %89, %90 : vector<1x128xf32>
    %c0_31 = arith.constant 0 : index
    %c0_32 = arith.constant 0 : index
    %92 = vector.load %arg6[%c0_31, %c0_32] : memref<1x128xf32, #tpu.memory_space<vmem>>, vector<1x128xf32>
    tpu.vector_store %arg6[%c0_31, %c0_32], %91 {strides = array<i32>} : memref<1x128xf32, #tpu.memory_space<vmem>>, vector<1x128xf32>,
    return
  }
  func.func @transform_0(%arg0: i32) -> (i32, i32) {
    %c0_i32 = arith.constant 0 : i32
    %c0_i32_0 = arith.constant 0 : i32
    %c0_i32_1 = arith.constant 0 : i32
    return %c0_i32, %c0_i32_0 : i32, i32
  }
  func.func @transform_1(%arg0: i32) -> i32 {
    %c0_i32 = arith.constant 0 : i32
    %c0_i32_0 = arith.constant 0 : i32
    return %c0_i32 : i32
  }
  func.func @transform_2(%arg0: i32) -> (i32, i32) {
    %c0_i32 = arith.constant 0 : i32
    %c0_i32_0 = arith.constant 0 : i32
    %c0_i32_1 = arith.constant 0 : i32
    return %c0_i32, %c0_i32_0 : i32, i32
  }
  func.func @transform_3(%arg0: i32) -> i32 {
    %c0_i32 = arith.constant 0 : i32
    %c0_i32_0 = arith.constant 0 : i32
    return %c0_i32 : i32
  }
  func.func @transform_4(%arg0: i32) -> (i32, i32) {
    %c0_i32 = arith.constant 0 : i32
    %c0_i32_0 = arith.constant 0 : i32
    return %c0_i32, %arg0 : i32, i32
  }
  func.func @transform_5(%arg0: i32) -> (i32, i32) {
    %c0_i32 = arith.constant 0 : i32
    %c0_i32_0 = arith.constant 0 : i32
    return %c0_i32, %arg0 : i32, i32
  }
}

</mosaic_0001>

<bundles_post_ra>
// kernel: deep_neural_network.1
= control target key start
LH: loop header
LB: loop body
LE: loop exit
PB: predicated region body
PF: predicated region fallthrough
CT: control target
= control target key end

     0   :  { %11 = vsyncpa [#allocation4], 0  ;;  %s309_s0 = inlined_call_operand.vmem [shape: f32[4,2], index: 0, kind: input, shape index: {}]   ;;  %s310_s1 = inlined_call_operand.vmem [shape: f32[4], index: 1, kind: input, shape index: {}]   ;;  %s311_s2 = inlined_call_operand.vmem [shape: f32[1,4], index: 2, kind: input, shape index: {}]   ;;  %s312_s3 = inlined_call_operand.<no memory space> [shape: f32[1], index: 3, kind: input, shape index: {}]   ;;  %s313_s4 = inlined_call_operand.vmem [shape: f32[2,128], index: 4, kind: input, shape index: {}]   ;;  %s314_s5 = inlined_call_operand.vmem [shape: f32[1,128], index: 5, kind: output, shape index: {}]  }
   0x1   :  { %12 = vsyncpa [#allocation6], 0  ;;  %s29_s20 = sshll.u32 %s310_s1, 4  ;;  %s19_s23 = sshll.u32 %s309_s0, 4  ;;  %s30_s20 = int_to_ptr.vmem [resolvable:$true] %s29_s20  ;;  %s20_s23 = int_to_ptr.vmem [resolvable:$true] %s19_s23 }
   0x2   :  { %s206_s24 = scalar_lea.vmem %s30_s20, 16  ;;  %p211_p1 = scmp.lt.s32.totalorder %s30_s20, %s30_s20 }
   0x3   :  { %p207_p0 = scmp.ne.s32.totalorder %s30_s20, %s206_s24  ;;  %p212_p2 = scmp.lt.s32.totalorder %s206_s24, %s206_s24 }
   0x5   :  { %p213_p3 = por %p212_p2, %p211_p1 }
   0x7   :  { %p214_p4 = pnand %p213_p3, %p207_p0 }
   0x9   :  { %217 = shalt.err (!%p214_p4)
}
   0xa   :  { %s246_s25 = smov [#allocation5]   ;;  %s218_s26 = scalar_lea.vmem %s20_s23, 64 }
   0xb   :  { %32 = dma.vmem_to_smem %s30_s20, 16, %s246_s25, [#allocation6]  }
   0xc   :  { %p219_p5 = scmp.ne.s32.totalorder %s20_s23, %s218_s26  ;;  %p223_p6 = scmp.lt.s32.totalorder %s20_s23, %s20_s23 }
   0xd   :  { %p224_p7 = scmp.lt.s32.totalorder %s218_s26, %s218_s26 }
   0xf   :  { %p225_p8 = por %p224_p7, %p223_p6 }
  0x11   :  { %p226_p9 = pnand %p225_p8, %p219_p5 }
  0x13   :  { %229 = shalt.err (!%p226_p9)
}
  0x14   :  { %s247_s1 = smov [#allocation3]   ;;  %s39_s28 = sshll.u32 %s311_s2, 4  ;;  %s40_s28 = int_to_ptr.vmem [resolvable:$true] %s39_s28 }
  0x15   :  { %22 = dma.vmem_to_smem %s20_s23, 64, %s247_s1, [#allocation4]  }
  0x16   :  { %s230_s29 = scalar_lea.vmem %s40_s28, 16  ;;  %p235_p11 = scmp.lt.s32.totalorder %s40_s28, %s40_s28 }
  0x17   :  { %p231_p10 = scmp.ne.s32.totalorder %s40_s28, %s230_s29  ;;  %p236_p12 = scmp.lt.s32.totalorder %s230_s29, %s230_s29 }
  0x19   :  { %p237_p13 = por %p236_p12, %p235_p11 }
  0x1b   :  { %p238_p0 = pnand %p237_p13, %p231_p10 }
  0x1d   :  { %241 = shalt.err (!%p238_p0)
}
  0x1e   :  { %s248_s30 = smov [#allocation7]  }
  0x1f   :  { %42 = dma.vmem_to_smem %s40_s28, 16, %s248_s30, [#allocation6]  }
  0x20   :  { %242 = dma.done.wait [#allocation4], 64  }
  0x21   :  { %243 = vsyncadd [#allocation4], 4294967232 }
  0x22   :  { %244 = dma.done.wait [#allocation6], 32  }
  0x23   :  { %245 = vsyncadd [#allocation6], 4294967264 }
  0x24   :  { %56 = sfence }
  0x25   :  { %s58_s6 = sld [smem:[#allocation3]]  ;;  %s165_s7 = sld [smem:[#allocation3 + $0x1]]  ;;  %v57_v0 = vld [vmem:[%s313_s4] sm:$0x3]  ;;  %v150_v59 = vstv %s312_s3 }
  0x26   :  { %s167_s8 = sld [smem:[#allocation3 + $0x80]]  ;;  %s168_s2 = sld [smem:[#allocation3 + $0x81]] }
  0x27   :  { %s288_s9 = sld [smem:[#allocation5]]  ;;  %s172_s11 = sld [smem:[#allocation3 + $0x101]] }
  0x28   :  { %s171_s10 = sld [smem:[#allocation3 + $0x100]]  ;;  %s293_s14 = sld [smem:[#allocation5 + $0x1]] }
  0x29   :  { %s175_s15 = sld [smem:[#allocation3 + $0x180]]  ;;  %s295_s16 = sld [smem:[#allocation5 + $0x2]] }
  0x2a   :  { %s176_s17 = sld [smem:[#allocation3 + $0x181]]  ;;  %s297_s18 = sld [smem:[#allocation5 + $0x3]] }
  0x2b   :  { %v59_v1 = vstv %s58_s6  ;;  %v62_v2 = vstv %s165_s7  ;;  %s134_s4 = sld [smem:[#allocation7]]  ;;  %s179_s19 = sld [smem:[#allocation7 + $0x1]] }
  0x2c   :  { %v60_v3 = vmul.f32 %v59_v1, %v57_v0  ;;  %v63_v4 = vmul.f32 %v62_v2, %v57_v0  ;;  %v78_v5 = vstv %s167_s8  ;;  %v81_v7 = vstv %s168_s2  ;;  %s180_s20 = sld [smem:[#allocation7 + $0x2]]  ;;  %s181_s21 = sld [smem:[#allocation7 + $0x3]] }
  0x2d   :  { %v79_v6 = vmul.f32 %v78_v5, %v57_v0  ;;  %v82_v9 = vmul.f32 %v81_v7, %v57_v0  ;;  %v100_v11 = vstv %s172_s11  ;;  %v69_v12 = vstv %s288_s9 }
  0x2e   :  { %v65_v8 = vrot.slane %v63_v4, 1  ;;  %v97_v10 = vstv %s171_s10  ;;  %v101_v14 = vmul.f32 %v100_v11, %v57_v0  ;;  %v88_v19 = vstv %s293_s14 }
  0x2f   :  { %v98_v13 = vmul.f32 %v97_v10, %v57_v0  ;;  %v116_v15 = vstv %s175_s15  ;;  %v84_v17 = vrot.slane %v82_v9, 1  ;;  %v107_v25 = vstv %s295_s16 }
  0x30   :  { %v67_v16 = vadd.f32 %v65_v8, %v60_v3  ;;  %v119_v18 = vstv %s176_s17  ;;  %v103_v20 = vrot.slane %v101_v14, 1  ;;  %v117_v21 = vmul.f32 %v116_v15, %v57_v0 }
  0x31   :  { %v120_v22 = vmul.f32 %v119_v18, %v57_v0  ;;  %v86_v24 = vadd.f32 %v84_v17, %v79_v6  ;;  %v126_v30 = vstv %s297_s18  ;;  %v135_v45 = vstv %s134_s4 }
  0x32   :  { %v70_v23 = vadd.f32 %v69_v12, %v67_v16  ;;  %v105_v26 = vadd.f32 %v103_v20, %v98_v13  ;;  %v138_v47 = vstv %s179_s19  ;;  %v142_v49 = vstv %s180_s20 }
  0x33   :  { %v122_v27 = vrot.slane %v120_v22, 1  ;;  %v89_v29 = vadd.f32 %v88_v19, %v86_v24  ;;  %v146_v53 = vstv %s181_s21 }
  0x34   :  { %v166_v28 = vmul.f32 -1.442695, %v70_v23  ;;  %v108_v31 = vadd.f32 %v107_v25, %v105_v26 }
  0x35   :  { %v124_v32 = vadd.f32 %v122_v27, %v117_v21  ;;  %v170_v33 = vmul.f32 -1.442695, %v89_v29 }
  0x36   :  { %186 = vpow2.f32 %v166_v28  ;;  %v174_v34 = vmul.f32 -1.442695, %v108_v31 }
  0x37   :  { %v127_v35 = vadd.f32 %v126_v30, %v124_v32  ;;  %188 = vpow2.f32 %v170_v33 }
  0x38   :  { %190 = vpow2.f32 %v174_v34 }
  0x39   :  { %v178_v36 = vmul.f32 -1.442695, %v127_v35 }
  0x3b   :  { %192 = vpow2.f32 %v178_v36 }
  0x40   :  { %v187_v37 = vpop.eup %186 }
  0x41   :  { %v74_v38 = vadd.f32 1.0, %v187_v37  ;;  %v189_v39 = vpop.eup %188 }
  0x42   :  { %v191_v40 = vpop.eup %190  ;;  %v93_v41 = vadd.f32 1.0, %v189_v39 }
  0x43   :  { %194 = vrcp.f32 %v74_v38  ;;  %v112_v42 = vadd.f32 1.0, %v191_v40 }
  0x44   :  { %196 = vrcp.f32 %v93_v41 }
  0x45   :  { %v193_v43 = vpop.eup %192  ;;  %198 = vrcp.f32 %v112_v42 }
  0x46   :  { %v131_v44 = vadd.f32 1.0, %v193_v43 }
  0x48   :  { %200 = vrcp.f32 %v131_v44 }
  0x4d   :  { %v195_v46 = vpop.eup %194 }
  0x4e   :  { %v136_v48 = vmul.f32 %v195_v46, %v135_v45  ;;  %v197_v50 = vpop.eup %196 }
  0x4f   :  { %v199_v51 = vpop.eup %198  ;;  %v139_v52 = vmul.f32 %v197_v50, %v138_v47 }
  0x50   :  { %v143_v54 = vmul.f32 %v199_v51, %v142_v49 }
  0x51   :  { %v140_v56 = vadd.f32 %v139_v52, %v136_v48 }
  0x52   :  { %v201_v55 = vpop.eup %200 }
  0x53   :  { %v147_v57 = vmul.f32 %v201_v55, %v146_v53  ;;  %v144_v58 = vadd.f32 %v143_v54, %v140_v56 }
  0x55   :  { %v148_v60 = vadd.f32 %v147_v57, %v144_v58 }
  0x57   :  { %v151_v61 = vadd.f32 %v150_v59, %v148_v60 }
  0x59   :  { %v182_v62 = vmul.f32 -1.442695, %v151_v61 }
  0x5b   :  { %202 = vpow2.f32 %v182_v62 }
  0x65   :  { %v203_v63 = vpop.eup %202 }
  0x66   :  { %v155_v0 = vadd.f32 1.0, %v203_v63 }
  0x68   :  { %204 = vrcp.f32 %v155_v0 }
  0x72   :  { %v205_v1 = vpop.eup %204 }
  0x73   :  { %158 = vst [vmem:[%s314_s5] sm:$0x1] %v205_v1 }
  0x74   :  { %163 = vsyncpa [#allocation4], 1 }
  0x75   :  { %164 = vsyncpa [#allocation6], 1 }

</bundles_post_ra>
